<compile_context>
chip_gen: v7x
topology: tpu7x:2x2x1
jax: 0.10.0
libtpu: 0.0.40
codegen_flags: <defaults>
</compile_context>

<pallas_src>
import jax
import jax.numpy as jnp
from jax import lax
from jax.experimental import pallas as pl
from jax.experimental.pallas import tpu as pltpu


def _sigmoid(x):
    # Single EUP push (tanh) + a cheap VALU fma, instead of exp + reciprocal.
    return 0.5 * jnp.tanh(0.5 * x) + 0.5


def mlp_kernel(x_ref, w1_ref, b1_ref, w2_ref, b2_ref, o_ref):
    # x_ref : (TB, D)  bf16   batch tile (software-pipelined HBM->VMEM)
    # w1_ref: (H, D)   bf16   resident across grid steps
    # b1_ref: (H, 1)   f32    resident
    # w2_ref: (H, 1)   f32    resident
    # b2_ref: (1, 1)   f32    SMEM scalar
    # o_ref : (1, TB)  f32    lane-dense output tile

    # Layer 1: contract the feature dim of both operands -> (H, TB).
    # H rides the sublanes, batch rides the lanes: fully lane-dense downstream,
    # and the MXU result is full width (N = TB) instead of N = 32.
    h = lax.dot_general(
        w1_ref[...], x_ref[...],
        (((1,), (1,)), ((), ())),
        preferred_element_type=jnp.float32,
    )                                                    # (H, TB) f32
    h = _sigmoid(h + b1_ref[...])                        # (H,1) broadcast over lanes

    # Layer 2: matvec as VPU multiply + sublane reduce (XLU) -> lane-dense (1, TB).
    y = jnp.sum(h * w2_ref[...], axis=0, keepdims=True)
    y = y + b2_ref[0, 0]
    o_ref[...] = _sigmoid(y).astype(o_ref.dtype)


def mushroom_mlp_forward(x, w1, b1, w2, b2, *, tb=8192):
    """x: (B, 111); w1: (H, 111); b1: (H,); w2: (1, H); b2: (1,) -> (B, 1) f32.

    For best performance pass x (and w1) already as bfloat16; f32 inputs are
    cast at the boundary (an extra XLA pass over x unless it fuses upstream).
    """
    B, D = x.shape
    H = w1.shape[0]

    # Clamp the batch tile: the whole batch if it fits in one tile, otherwise a
    # multiple of 128 so both the (tb, D) x block (sublane rule) and the
    # (1, tb) output block (lane rule) are legal. The last tile may be partial;
    # Pallas masks the writeback.
    if B <= tb:
        tb = B
    else:
        tb = max(128, (min(tb, B) // 128) * 128)
    grid = (pl.cdiv(B, tb),)

    x_bf = x if x.dtype == jnp.bfloat16 else x.astype(jnp.bfloat16)
    w1_bf = w1 if w1.dtype == jnp.bfloat16 else w1.astype(jnp.bfloat16)
    b1_c = b1.reshape(H, 1).astype(jnp.float32)
    w2_c = w2.reshape(H, 1).astype(jnp.float32)      # (1, H) -> (H, 1) column
    b2_s = b2.reshape(1, 1).astype(jnp.float32)

    cost = pl.CostEstimate(
        flops=2 * B * D * H + 2 * B * H,
        transcendentals=B * H + B,
        bytes_accessed=B * D * 2 + H * D * 2 + (2 * H + 1) * 4 + B * 4,
    )

    out = pl.pallas_call(
        mlp_kernel,
        out_shape=jax.ShapeDtypeStruct((1, B), jnp.float32),
        grid=grid,
        in_specs=[
            pl.BlockSpec((tb, D), lambda i: (i, 0)),            # x: batch-tiled
            pl.BlockSpec((H, D), lambda i: (0, 0)),             # W1: resident
            pl.BlockSpec((H, 1), lambda i: (0, 0)),             # b1: resident
            pl.BlockSpec((H, 1), lambda i: (0, 0)),             # W2: resident
            pl.BlockSpec(memory_space=pltpu.MemorySpace.SMEM),  # b2: scalar
        ],
        out_specs=pl.BlockSpec((1, tb), lambda i: (0, i)),      # lane-dense out
        compiler_params=pltpu.CompilerParams(
            dimension_semantics=("parallel",),
            # Explicit scoped-VMEM budget, safe on all generations (v7x has
            # only 64 MiB physical). TB=8192 needs ~6 MiB (4 MiB double-buffered
            # bf16 x + 1 MiB f32 activation + out buffers), so there is ample
            # headroom; raise this when sweeping TB above ~16K.
            vmem_limit_bytes=32 * 1024 * 1024,
        ),
        cost_estimate=cost,
    )(x_bf, w1_bf, b1_c, w2_c, b2_s)

    return out.reshape(B, 1)   # (1, B) -> (B, 1): free metadata reshape


def init_params(key, num_neurons):
    """Deterministic PyTorch-style uniform(-1/sqrt(fan_in), 1/sqrt(fan_in)) init."""
    k1, k2, k3, k4 = jax.random.split(key, 4)
    in1, in2 = 111, num_neurons
    lim1 = 1.0 / jnp.sqrt(jnp.float32(in1))
    lim2 = 1.0 / jnp.sqrt(jnp.float32(in2))
    w1 = jax.random.uniform(k1, (num_neurons, in1), jnp.float32, -lim1, lim1)
    b1 = jax.random.uniform(k2, (num_neurons,), jnp.float32, -lim1, lim1)
    w2 = jax.random.uniform(k3, (1, num_neurons), jnp.float32, -lim2, lim2)
    b2 = jax.random.uniform(k4, (1,), jnp.float32, -lim2, lim2)
    return w1, b1, w2, b2


if __name__ == "__main__":
    key = jax.random.PRNGKey(0)
    kx1, kx2, kp = jax.random.split(key, 3)

    NUM_NEURONS = 32
    w1, b1, w2, b2 = init_params(kp, NUM_NEURONS)

    def reference(x):
        return jax.nn.sigmoid(jax.nn.sigmoid(x @ w1.T + b1) @ w2.T + b2)

    # bf16 matmul inputs vs the f32 reference => loosened tolerance.
    ATOL = 2e-2

    # Case 1: tiny batch, single grid step (all block dims == array dims).
    x_small = jax.random.normal(kx1, (8, 111), jnp.float32)
    out_small = jax.block_until_ready(mushroom_mlp_forward(x_small, w1, b1, w2, b2))
    assert out_small.shape == (8, 1)
    assert jnp.allclose(out_small, reference(x_small), atol=ATOL, rtol=ATOL)

    # Case 2: multi-step pipelined grid with a partial last tile
    # (576 = 2*256 + 64), exercising the masked lane-dense writeback.
    x_big = jax.random.normal(kx2, (576, 111), jnp.float32)
    out_big = jax.block_until_ready(
        mushroom_mlp_forward(x_big, w1, b1, w2, b2, tb=256)
    )
    assert out_big.shape == (576, 1)
    assert jnp.allclose(out_big, reference(x_big), atol=ATOL, rtol=ATOL)

    print("KERNEL_OK")
</pallas_src>

<mosaic_0001>
module attributes {stable_mosaic.version = 11 : i64} {
  func.func @mlp_kernel(%arg0: i32, %arg1: memref<8x111xbf16, #tpu.memory_space<vmem>>, %arg2: memref<32x111xbf16, #tpu.memory_space<vmem>>, %arg3: memref<32x1xf32, #tpu.memory_space<vmem>>, %arg4: memref<32x1xf32, #tpu.memory_space<vmem>>, %arg5: memref<1x1xf32, #tpu.memory_space<smem>>, %arg6: memref<1x8xf32, #tpu.memory_space<vmem>>) attributes {dimension_semantics = [#tpu.dimension_semantics<parallel>], iteration_bounds = array<i64: 1>, scalar_prefetch = 0 : i64, scratch_operands = 0 : i64, tpu.core_type = #tpu.core_type<tc>, window_params = [{transform_indices = @transform_0, window_bounds = array<i64: 8, 111>}, {pipeline_mode = #tpu.pipeline_mode<synchronous>, transform_indices = @transform_1, window_bounds = array<i64: 32, 111>}, {pipeline_mode = #tpu.pipeline_mode<synchronous>, transform_indices = @transform_2, window_bounds = array<i64: 32, 1>}, {pipeline_mode = #tpu.pipeline_mode<synchronous>, transform_indices = @transform_3, window_bounds = array<i64: 32, 1>}, {transform_indices = @transform_4, window_bounds = array<i64: 1, 1>}, {transform_indices = @transform_5, window_bounds = array<i64: 1, 8>}]} {
    %c0 = arith.constant 0 : index
    %c0_0 = arith.constant 0 : index
    %0 = vector.load %arg2[%c0, %c0_0] : memref<32x111xbf16, #tpu.memory_space<vmem>>, vector<32x111xbf16>
    %c0_1 = arith.constant 0 : index
    %c0_2 = arith.constant 0 : index
    %1 = vector.load %arg1[%c0_1, %c0_2] : memref<8x111xbf16, #tpu.memory_space<vmem>>, vector<8x111xbf16>
    %cst = arith.constant dense<0.000000e+00> : vector<32x8xf32>
    %2 = tpu.matmul %0, %1, %cst {dimension_numbers = #tpu.dot_dimension_numbers<[1], [1], [0], [0], [0, 0, 1, 0], [], []>} : vector<32x111xbf16>, vector<8x111xbf16>, vector<32x8xf32> -> vector<32x8xf32>
    %c0_3 = arith.constant 0 : index
    %c0_4 = arith.constant 0 : index
    %3 = vector.load %arg3[%c0_3, %c0_4] : memref<32x1xf32, #tpu.memory_space<vmem>>, vector<32x1xf32>
    %4 = vector.broadcast %3 : vector<32x1xf32> to vector<32x8xf32>
    %5 = arith.addf %2, %4 : vector<32x8xf32>
    %cst_5 = arith.constant 5.000000e-01 : f32
    %6 = vector.broadcast %cst_5 : f32 to vector<32x8xf32>
    %7 = arith.mulf %6, %5 : vector<32x8xf32>
    %8 = math.tanh %7 : vector<32x8xf32>
    %cst_6 = arith.constant 5.000000e-01 : f32
    %9 = vector.broadcast %cst_6 : f32 to vector<32x8xf32>
    %10 = arith.mulf %9, %8 : vector<32x8xf32>
    %cst_7 = arith.constant 5.000000e-01 : f32
    %11 = vector.broadcast %cst_7 : f32 to vector<32x8xf32>
    %12 = arith.addf %10, %11 : vector<32x8xf32>
    %c0_8 = arith.constant 0 : index
    %c0_9 = arith.constant 0 : index
    %13 = vector.load %arg4[%c0_8, %c0_9] : memref<32x1xf32, #tpu.memory_space<vmem>>, vector<32x1xf32>
    %14 = vector.broadcast %13 : vector<32x1xf32> to vector<32x8xf32>
    %15 = arith.mulf %12, %14 : vector<32x8xf32>
    %cst_10 = arith.constant dense<0.000000e+00> : vector<8xf32>
    %16 = vector.multi_reduction <add>, %15, %cst_10 [0] : vector<32x8xf32> to vector<8xf32>
    %17 = vector.shape_cast %16 : vector<8xf32> to vector<1x8xf32>
    %c0_11 = arith.constant 0 : index
    %c0_12 = arith.constant 0 : index
    %18 = memref.load %arg5[%c0_11, %c0_12] : memref<1x1xf32, #tpu.memory_space<smem>>
    %19 = vector.broadcast %18 : f32 to vector<1x8xf32>
    %20 = arith.addf %17, %19 : vector<1x8xf32>
    %cst_13 = arith.constant 5.000000e-01 : f32
    %21 = vector.broadcast %cst_13 : f32 to vector<1x8xf32>
    %22 = arith.mulf %21, %20 : vector<1x8xf32>
    %23 = math.tanh %22 : vector<1x8xf32>
    %cst_14 = arith.constant 5.000000e-01 : f32
    %24 = vector.broadcast %cst_14 : f32 to vector<1x8xf32>
    %25 = arith.mulf %24, %23 : vector<1x8xf32>
    %cst_15 = arith.constant 5.000000e-01 : f32
    %26 = vector.broadcast %cst_15 : f32 to vector<1x8xf32>
    %27 = arith.addf %25, %26 : vector<1x8xf32>
    %c0_16 = arith.constant 0 : index
    %c0_17 = arith.constant 0 : index
    %28 = vector.load %arg6[%c0_16, %c0_17] : memref<1x8xf32, #tpu.memory_space<vmem>>, vector<1x8xf32>
    tpu.vector_store %arg6[%c0_16, %c0_17], %27 {strides = array<i32>} : memref<1x8xf32, #tpu.memory_space<vmem>>, vector<1x8xf32>,
    return
  }
  func.func @transform_0(%arg0: i32) -> (i32, i32) {
    %c0_i32 = arith.constant 0 : i32
    %c0_i32_0 = arith.constant 0 : i32
    return %arg0, %c0_i32 : i32, i32
  }
  func.func @transform_1(%arg0: i32) -> (i32, i32) {
    %c0_i32 = arith.constant 0 : i32
    %c0_i32_0 = arith.constant 0 : i32
    %c0_i32_1 = arith.constant 0 : i32
    return %c0_i32, %c0_i32_0 : i32, i32
  }
  func.func @transform_2(%arg0: i32) -> (i32, i32) {
    %c0_i32 = arith.constant 0 : i32
    %c0_i32_0 = arith.constant 0 : i32
    %c0_i32_1 = arith.constant 0 : i32
    return %c0_i32, %c0_i32_0 : i32, i32
  }
  func.func @transform_3(%arg0: i32) -> (i32, i32) {
    %c0_i32 = arith.constant 0 : i32
    %c0_i32_0 = arith.constant 0 : i32
    %c0_i32_1 = arith.constant 0 : i32
    return %c0_i32, %c0_i32_0 : i32, i32
  }
  func.func @transform_4(%arg0: i32) -> (i32, i32) {
    %c0_i32 = arith.constant 0 : i32
    %c0_i32_0 = arith.constant 0 : i32
    %c0_i32_1 = arith.constant 0 : i32
    return %c0_i32, %c0_i32_0 : i32, i32
  }
  func.func @transform_5(%arg0: i32) -> (i32, i32) {
    %c0_i32 = arith.constant 0 : i32
    %c0_i32_0 = arith.constant 0 : i32
    return %c0_i32, %arg0 : i32, i32
  }
}

</mosaic_0001>

<bundles_post_ra>
// kernel: tpu_custom_call.1
= control target key start
LH: loop header
LB: loop body
LE: loop exit
PB: predicated region body
PF: predicated region fallthrough
CT: control target
= control target key end

     0   :  { %vm62_vm0 = vcmask 908288   ;;  %v256_v5 = vmov 0   ;;  %s340_s0 = inlined_call_operand.vmem [shape: bf16[8,111], index: 0, kind: input, shape index: {}]   ;;  %s341_s1 = inlined_call_operand.vmem [shape: bf16[32,111], index: 1, kind: input, shape index: {}]   ;;  %s342_s2 = inlined_call_operand.vmem [shape: f32[32,1], index: 2, kind: input, shape index: {}]   ;;  %s343_s3 = inlined_call_operand.vmem [shape: f32[32,1], index: 3, kind: input, shape index: {}]   ;;  %s344_s4 = inlined_call_operand.<no memory space> [shape: f32[1,1], index: 4, kind: input, shape index: {}]   ;;  %s345_s5 = inlined_call_operand.hbm [shape: f32[1,8], index: 5, kind: output, shape index: {}]  }
   0x1   :  { %v27_v0 = vld [vmem:[%s340_s0] sm:$0xf]  ;;  %v30_v4 = vld [vmem:[%s342_s2 + $0x10] sm:$0xff]  ;;  %218 = vset.pattern.permute.xlu0 %v256_v5  ;;  %219 = vset.pattern.permute.xlu1 %v256_v5  ;;  %v221_v6 = vld [vmem:[%s341_s1 + $0x8] sm:$0xff]  }
   0x2   :  { %v220_v1 = vld [vmem:[%s341_s1] sm:$0xff]   ;;  %215 = vmatprep.subr.msk.bf16.mxu0 %vm62_vm0, %v27_v0  ;;  %v70_v2 = vsel %vm62_vm0, %v27_v0, 0  ;;  %44 = vperm.xlu1 %219, %v30_v4   ;;  %v29_v7 = vld [vmem:[%s342_s2 + $0x8] sm:$0xff]  ;;  %v31_v8 = vld [vmem:[%s342_s2 + $0x18] sm:$0xff] }
   0x3   :  { %210 = vmatpush3.bf16.xpose.msra.mxu0 %v70_v2  ;;  %211 = vmatprep.mubr.msk.bf16.mxu0 %vm62_vm0, %v220_v1  ;;  %v28_v3 = vld [vmem:[%s342_s2] sm:$0xff] }
   0x4   :  { %34 = vperm.xlu0 %218, %v28_v3  }
   0x5   :  { %11 = vsyncpa [#allocation4], 0  ;;  %v137_v9 = vld [vmem:[%s343_s3] sm:$0xff]  ;;  %v138_v10 = vld [vmem:[%s343_s3 + $0x8] sm:$0xff]  ;;  %vm165_vm1 = vcmask 64512   ;;  %v180_v61 = vstv %s344_s4  ;;  %s257_s13 = smov [#allocation3]  }
   0x6   :  { %49 = vperm.xlu1 %219, %v31_v8   ;;  %v139_v11 = vld [vmem:[%s343_s3 + $0x10] sm:$0xff]  ;;  %v140_v12 = vld [vmem:[%s343_s3 + $0x18] sm:$0xff]  ;;  %s194_s14 = sshll.u32 %s257_s13, 4  ;;  %vm186_vm2 = vcmask 57344   ;;  %s195_s14 = int_to_ptr.vmem [resolvable:$true] %s194_s14 }
   0x7   :  { %s232_s15 = scalar_lea.vmem %s195_s14, 16  ;;  %s236_s16 = scalar_lea.vmem %s195_s14, 32 }
   0x8   :  { %39 = vperm.xlu0 %218, %v29_v7   ;;  %p233_p0 = scmp.ne.s32.totalorder %s195_s14, %s232_s15  ;;  %p237_p1 = scmp.lt.s32.totalorder %s195_s14, %s195_s14 }
   0x9   :  { %p238_p2 = scmp.lt.s32.totalorder %s236_s16, %s232_s15 }
   0xa   :  { %212 = vmatmul.mubr.msk.bf16.vlgmr.msra.gmra.mrb[0].mxu0 %vm62_vm0, %v221_v6  ;;  %148 = vperm.xlu1 %219, %v138_v10  }
   0xb   :  { %p239_p3 = por %p238_p2, %p237_p1 }
   0xc   :  { %143 = vperm.xlu0 %218, %v137_v9  }
   0xd   :  { %p240_p4 = pnand %p239_p3, %p233_p0 }
   0xe   :  { %158 = vperm.xlu1 %219, %v140_v12  }
  0x10   :  { %153 = vperm.xlu0 %218, %v139_v11  }
  0x81   :  { %v45_v13 = vpop.permute.xlu1 %44 }
  0x83   :  { %v35_v14 = vpop.permute.xlu0 %34 }
  0x85   :  { %v50_v18 = vpop.permute.xlu1 %49 }
  0x87   :  { %v40_v21 = vpop.permute.xlu0 %39 }
  0x89   :  { %v149_v36 = vpop.permute.xlu1 %148 }
  0x8b   :  { %v144_v31 = vpop.permute.xlu0 %143 }
  0x8d   :  { %v159_v47 = vpop.permute.xlu1 %158 }
  0x8f   :  { %v154_v44 = vpop.permute.xlu0 %153 }
  0xdd   :  { %v213_v15 = vpop.f32.mrb[0].mxu0 }
  0xde   :  { %v115_v16 = vadd.f32 %v213_v15, %v45_v13  ;;  %v106_v17 = vpop.f32.mrb[1].mxu0 }
  0xdf   :  { %v107_v19 = vadd.f32 %v106_v17, %v35_v14  ;;  %v214_v20 = vpop.f32.mrb[2].mxu0 }
  0xe0   :  { %v123_v22 = vmul.f32 0.5, %v115_v16  ;;  %v118_v23 = vadd.f32 %v214_v20, %v50_v18  ;;  %v109_v24 = vpop.f32.mrb[3].mxu0 }
  0xe1   :  { %v121_v25 = vmul.f32 0.5, %v107_v19  ;;  %v110_v26 = vadd.f32 %v109_v24, %v40_v21 }
  0xe2   :  { %222 = vtanh.f32 %v123_v22  ;;  %v124_v27 = vmul.f32 0.5, %v118_v23 }
  0xe3   :  { %224 = vtanh.f32 %v121_v25  ;;  %v122_v28 = vmul.f32 0.5, %v110_v26 }
  0xe4   :  { %226 = vtanh.f32 %v124_v27 }
  0xe5   :  { %228 = vtanh.f32 %v122_v28 }
  0xec   :  { %v223_v29 = vpop.eup %222 }
  0xed   :  { %v225_v30 = vpop.eup %224  ;;  %v131_v32 = vmul.f32 0.5, %v223_v29 }
  0xee   :  { %v227_v33 = vpop.eup %226  ;;  %v129_v34 = vmul.f32 0.5, %v225_v30 }
  0xef   :  { %v229_v35 = vpop.eup %228  ;;  %v132_v37 = vmul.f32 0.5, %v227_v33  ;;  %v135_v38 = vadd.f32 0.5, %v131_v32 }
  0xf0   :  { %v133_v39 = vadd.f32 0.5, %v129_v34  ;;  %v130_v40 = vmul.f32 0.5, %v229_v35 }
  0xf1   :  { %v136_v42 = vadd.f32 0.5, %v132_v37  ;;  %v163_v45 = vmul.f32 %v154_v44, %v135_v38 }
  0xf2   :  { %v161_v41 = vmul.f32 %v144_v31, %v133_v39  ;;  %v134_v43 = vadd.f32 0.5, %v130_v40 }
  0xf3   :  { %v164_v48 = vmul.f32 %v159_v47, %v136_v42  ;;  %v169_v52 = vsel %vm165_vm1, %v163_v45, 0.0 }
  0xf4   :  { %v162_v46 = vmul.f32 %v149_v36, %v134_v43  ;;  %v166_v49 = vsel %vm165_vm1, %v161_v41, 0.0 }
  0xf5   :  { %v171_v54 = vsel %vm165_vm1, %v164_v48, 0.0 }
  0xf6   :  { %v167_v50 = vsel %vm165_vm1, %v162_v46, 0.0 }
  0xf7   :  { %v168_v51 = vadd.f32 %v167_v50, %v166_v49 }
  0xf9   :  { %v170_v53 = vadd.f32 %v169_v52, %v168_v51 }
  0xfb   :  { %v172_v55 = vadd.f32 %v171_v54, %v170_v53 }
  0xfd   :  { %v173_v56 = vrot.slane %v172_v55, 4 }
  0xff   :  { %v174_v57 = vadd.f32 %v173_v56, %v172_v55 }
 0x101   :  { %v175_v58 = vrot.slane %v174_v57, 2 }
 0x103   :  { %v176_v59 = vadd.f32 %v175_v58, %v174_v57 }
 0x105   :  { %v177_v60 = vrot.slane %v176_v59, 1 }
 0x107   :  { %v178_v62 = vadd.f32 %v177_v60, %v176_v59 }
 0x109   :  { %v181_v63 = vadd.f32 %v180_v61, %v178_v62 }
 0x10b   :  { %v182_v0 = vmul.f32 0.5, %v181_v63 }
 0x10d   :  { %230 = vtanh.f32 %v182_v0 }
 0x117   :  { %v231_v1 = vpop.eup %230 }
 0x118   :  { %v184_v2 = vmul.f32 0.5, %v231_v1 }
 0x11a   :  { %v185_v3 = vadd.f32 0.5, %v184_v2 }
 0x11c   :  { %187 = vst.msk [vmem:[#allocation3] sm:$0x1] %vm186_vm2, %v185_v3 }
 0x11d   :  { %243 = shalt.err (!%p240_p4)
}
 0x11e   :  { %s244_s18 = scalar_lea.hbm %s345_s5, 16 }
 0x11f   :  { %p245_p5 = scmp.ne.s32.totalorder %s345_s5, %s244_s18  ;;  %p248_p6 = scmp.lt.u32.totalorder %s244_s18, %s345_s5 }
 0x121   :  { %p250_p7 = pnand %p248_p6, %p245_p5 }
 0x123   :  { %253 = shalt.err (!%p250_p7)
}
 0x124   :  { %197 = dma.vmem_to_hbm [thread:$0]  %s195_s14, 16, %s345_s5, [#allocation4]  }
 0x125   :  { %254 = dma.done.wait [#allocation4], 16  }
 0x126   :  { %255 = vsyncadd [#allocation4], 4294967280 }
 0x127   :  { %201 = vsyncpa [#allocation4], 1 }

</bundles_post_ra>
